<compile_context>
chip_gen: v7x
topology: tpu7x:2x2x1
jax: 0.10.0
libtpu: 0.0.40
codegen_flags: <defaults>
</compile_context>

<pallas_src>
import functools
import math

import jax
import jax.numpy as jnp
from jax.experimental import pallas as pl
from jax.experimental.pallas import tpu as pltpu


# --------------------------------------------------------------------------- #
# Tiling configuration
# --------------------------------------------------------------------------- #
_TM = 256            # row (sublane) tile
_TN = 256            # output-feature (lane) tile -- sized for 256-wide MXU
_TK = 512            # contraction tile
_SUBLANE = 16        # bf16-safe sublane granularity
_LANE = 128
_VMEM_LIMIT_BYTES = 32 * 1024 * 1024   # safe on v5e/v6e (128 MiB) and v7x (64 MiB)


def _round_up(x, m):
    return (x + m - 1) // m * m


def _padded(dim):
    """Every logical dimension is padded to a lane multiple exactly once."""
    return _round_up(dim, _LANE)


def _divisor_tile(padded, nominal, minimum):
    """Largest multiple of `minimum` that divides `padded` and is <= nominal."""
    t = max(minimum, min(nominal, padded))
    t = (t // minimum) * minimum
    while padded % t != 0:
        t -= minimum
    return t


def _pad2d(x, rows, cols, dtype):
    x = jnp.asarray(x, dtype)
    return jnp.pad(x, ((0, rows - x.shape[0]), (0, cols - x.shape[1])))


# --------------------------------------------------------------------------- #
# Pallas kernels
# --------------------------------------------------------------------------- #
def _matmul_kernel(a_ref, b_ref, bias_ref, o_ref, acc_ref, *, act, alpha):
    """Tiled  out = act(A @ B + bias)  with f32 accumulation over the K grid axis."""
    k = pl.program_id(2)

    @pl.when(k == 0)
    def _():
        acc_ref[...] = jnp.zeros_like(acc_ref)

    acc_ref[...] += jnp.dot(a_ref[...], b_ref[...],
                            preferred_element_type=jnp.float32)

    @pl.when(k == pl.num_programs(2) - 1)
    def _():
        h = acc_ref[...] + bias_ref[...]          # (1, tn) broadcasts over rows
        if act == "leaky":
            h = jnp.where(h > 0, h, alpha * h)
        elif act == "relu":
            h = jnp.maximum(h, 0.0)
        o_ref[...] = h.astype(o_ref.dtype)


def _dual_linear_relu_kernel(a1_ref, a2_ref, w1_ref, w2_ref, bias_ref, o_ref):
    """out = relu(a1 @ w1 + a2 @ w2 + bias)  -- concat-free union Linear."""
    h = jnp.dot(a1_ref[...], w1_ref[...], preferred_element_type=jnp.float32)
    h = h + jnp.dot(a2_ref[...], w2_ref[...], preferred_element_type=jnp.float32)
    h = h + bias_ref[...]
    o_ref[...] = jnp.maximum(h, 0.0).astype(o_ref.dtype)


# --------------------------------------------------------------------------- #
# Kernel wrappers
# --------------------------------------------------------------------------- #
def tiled_matmul(a, b, bias=None, *, act="none", alpha=0.0, out_dtype=None):
    """A @ B (+bias) (+activation), all inputs already padded to lane multiples."""
    Mp, Kp = a.shape
    Kp2, Np = b.shape
    assert Kp == Kp2, (a.shape, b.shape)
    if out_dtype is None:
        out_dtype = a.dtype
    if bias is None:
        bias = jnp.zeros((1, Np), jnp.float32)

    tm = _divisor_tile(Mp, _TM, _SUBLANE)
    tn = _divisor_tile(Np, _TN, _LANE)
    tk = _divisor_tile(Kp, _TK, _LANE)
    grid = (Mp // tm, Np // tn, Kp // tk)

    return pl.pallas_call(
        functools.partial(_matmul_kernel, act=act, alpha=alpha),
        out_shape=jax.ShapeDtypeStruct((Mp, Np), out_dtype),
        grid_spec=pltpu.PrefetchScalarGridSpec(
            num_scalar_prefetch=0,
            grid=grid,
            in_specs=[
                pl.BlockSpec((tm, tk), lambda i, j, k: (i, k)),
                pl.BlockSpec((tk, tn), lambda i, j, k: (k, j)),
                pl.BlockSpec((1, tn), lambda i, j, k: (0, j)),
            ],
            out_specs=pl.BlockSpec((tm, tn), lambda i, j, k: (i, j)),
            scratch_shapes=[pltpu.VMEM((tm, tn), jnp.float32)],
        ),
        compiler_params=pltpu.CompilerParams(
            dimension_semantics=("parallel", "parallel", "arbitrary"),
            vmem_limit_bytes=_VMEM_LIMIT_BYTES),
    )(a, b, bias)


def dual_linear_relu(a1, a2, w1, w2, bias, *, out_dtype=jnp.float32):
    """relu(a1 @ w1 + a2 @ w2 + bias); K dims are small -> kept whole per tile."""
    Mp, K1 = a1.shape
    Mp2, K2 = a2.shape
    assert Mp == Mp2
    K1w, Np = w1.shape
    K2w, Np2 = w2.shape
    assert K1 == K1w and K2 == K2w and Np == Np2

    tm = _divisor_tile(Mp, _TM, _SUBLANE)
    tn = _divisor_tile(Np, _TN, _LANE)
    grid = (Mp // tm, Np // tn)

    return pl.pallas_call(
        _dual_linear_relu_kernel,
        out_shape=jax.ShapeDtypeStruct((Mp, Np), out_dtype),
        grid_spec=pltpu.PrefetchScalarGridSpec(
            num_scalar_prefetch=0,
            grid=grid,
            in_specs=[
                pl.BlockSpec((tm, K1), lambda i, j: (i, 0)),
                pl.BlockSpec((tm, K2), lambda i, j: (i, 0)),
                pl.BlockSpec((K1, tn), lambda i, j: (0, j)),
                pl.BlockSpec((K2, tn), lambda i, j: (0, j)),
                pl.BlockSpec((1, tn), lambda i, j: (0, j)),
            ],
            out_specs=pl.BlockSpec((tm, tn), lambda i, j: (i, j)),
        ),
        compiler_params=pltpu.CompilerParams(
            dimension_semantics=("parallel", "parallel"),
            vmem_limit_bytes=_VMEM_LIMIT_BYTES),
    )(a1, a2, w1, w2, bias)


def gcn_layer(adj_p, x_p, w_p, b_p, alpha):
    """leaky_relu(adj @ (x @ W) + b), with x @ W hoisted out of the adj loop."""
    support = tiled_matmul(x_p, w_p, None, act="none")          # [Np_src, Hp]
    return tiled_matmul(adj_p, support, b_p, act="leaky", alpha=alpha)


# --------------------------------------------------------------------------- #
# Parameter / input preparation (padding + dtype cast happen ONCE, not per stage)
# --------------------------------------------------------------------------- #
def init_params(key, feature_dim, hidden_dim):
    ks = jax.random.split(key, 12)

    def gc_params(kw, kb, fin, fout):
        stdv = 1.0 / math.sqrt(fout)
        w = jax.random.uniform(kw, (fin, fout), jnp.float32, -stdv, stdv)
        b = jax.random.uniform(kb, (fout,), jnp.float32, -stdv, stdv)
        return w, b

    def lin_params(kw, kb, fin, fout):
        stdv = 1.0 / math.sqrt(fin)
        w = jax.random.uniform(kw, (fout, fin), jnp.float32, -stdv, stdv)
        b = jax.random.uniform(kb, (fout,), jnp.float32, -stdv, stdv)
        return w, b

    return {
        "gc1": gc_params(ks[0], ks[1], feature_dim, hidden_dim),
        "gc2": gc_params(ks[2], ks[3], feature_dim, hidden_dim),
        "gc3": gc_params(ks[4], ks[5], hidden_dim, feature_dim),
        "gc4": gc_params(ks[6], ks[7], hidden_dim, feature_dim),
        "src_union": lin_params(ks[8], ks[9], 2 * feature_dim, feature_dim),
        "tgt_union": lin_params(ks[10], ks[11], 2 * feature_dim, feature_dim),
    }


def prepare_params(params, feature_dim, hidden_dim, compute_dtype=jnp.bfloat16):
    Fp, Hp = _padded(feature_dim), _padded(hidden_dim)

    def gc(p, fin_p, fout_p):
        w, b = p
        return (_pad2d(w, fin_p, fout_p, compute_dtype),
                _pad2d(b.reshape(1, -1), 1, fout_p, jnp.float32))

    def union(p):
        w, b = p                                  # w: [F, 2F]
        wt_top = _pad2d(w[:, :feature_dim].T, Fp, Fp, compute_dtype)
        wt_bot = _pad2d(w[:, feature_dim:].T, Fp, Fp, compute_dtype)
        bp = _pad2d(b.reshape(1, -1), 1, Fp, jnp.float32)
        return wt_top, wt_bot, bp

    return {
        "gc1": gc(params["gc1"], Fp, Hp),
        "gc2": gc(params["gc2"], Fp, Hp),
        "gc3": gc(params["gc3"], Hp, Fp),
        "gc4": gc(params["gc4"], Hp, Fp),
        "src_union": union(params["src_union"]),
        "tgt_union": union(params["tgt_union"]),
    }


def prepare_inputs(source_ufea, target_ufea, s_uv, s_vu, t_uv, t_vu,
                   feature_dim, compute_dtype=jnp.bfloat16):
    Fp = _padded(feature_dim)
    n_su, n_si = s_uv.shape
    n_tu, n_ti = t_uv.shape
    Su, Si, Tu, Ti = map(_padded, (n_su, n_si, n_tu, n_ti))
    return {
        "source_ufea": _pad2d(source_ufea, Su, Fp, compute_dtype),
        "target_ufea": _pad2d(target_ufea, Tu, Fp, compute_dtype),
        "source_UV": _pad2d(s_uv, Su, Si, compute_dtype),
        "source_VU": _pad2d(s_vu, Si, Su, compute_dtype),
        "target_UV": _pad2d(t_uv, Tu, Ti, compute_dtype),
        "target_VU": _pad2d(t_vu, Ti, Tu, compute_dtype),
    }


# --------------------------------------------------------------------------- #
# DGCNLayer forward
# --------------------------------------------------------------------------- #
def recbole_padding_user(embedding, domain, opt):
    total_u = opt["total_num_users"]
    overlap_u = opt["overlapped_num_users"]
    target_u = opt["target_num_users"]
    F = embedding.shape[1]
    temp = jnp.zeros((total_u, F), jnp.float32)
    if domain == "source":
        temp = temp.at[1:overlap_u].set(embedding[: overlap_u - 1])
        temp = temp.at[target_u:].set(embedding[overlap_u - 1:])
    else:  # target
        temp = temp.at[1:target_u].set(embedding)
    return temp


def dgcn_layer_forward(pparams, pinputs, opt, n_source_users, n_target_users):
    alpha = opt["leakey"]
    rate = opt["rate"]
    F_dim = opt["feature_dim"]
    # dropout is stored by the original module but never applied in forward.

    w1, b1 = pparams["gc1"]
    w2, b2 = pparams["gc2"]
    w3, b3 = pparams["gc3"]
    w4, b4 = pparams["gc4"]
    wsu_t, wsu_b, bsu = pparams["src_union"]
    wtu_t, wtu_b, btu = pparams["tgt_union"]

    s_ufea = pinputs["source_ufea"]
    t_ufea = pinputs["target_ufea"]

    # two-hop GCN paths -- activations remain padded (no host repad round-trips)
    s_ho = gcn_layer(pinputs["source_VU"], s_ufea, w1, b1, alpha)
    s_ho = gcn_layer(pinputs["source_UV"], s_ho, w3, b3, alpha)
    t_ho = gcn_layer(pinputs["target_VU"], t_ufea, w2, b2, alpha)
    t_ho = gcn_layer(pinputs["target_UV"], t_ho, w4, b4, alpha)

    # union linears: concat eliminated (two dots), ReLU fused in the epilogue
    s_user = dual_linear_relu(s_ho, s_ufea, wsu_t, wsu_b, bsu)
    t_user = dual_linear_relu(t_ho, t_ufea, wtu_t, wtu_b, btu)

    # slice exactly once, then recbole zero-fill scatter + rate mix
    # (ReLU already applied; relu(0)=0 so it commutes with the zero-fill scatter)
    s_user = recbole_padding_user(s_user[:n_source_users, :F_dim], "source", opt)
    t_user = recbole_padding_user(t_user[:n_target_users, :F_dim], "target", opt)
    mixed = rate * s_user + (1.0 - rate) * t_user
    return mixed, mixed


# --------------------------------------------------------------------------- #
# Pure-JAX f32 reference
# --------------------------------------------------------------------------- #
def _reference(params, opt, s_ufea, t_ufea, s_uv, s_vu, t_uv, t_vu):
    alpha, rate = opt["leakey"], opt["rate"]

    def gcn_ref(adj, x, w, b):
        h = adj @ (x @ w) + b
        return jnp.where(h > 0, h, alpha * h)

    w1, b1 = params["gc1"]; w2, b2 = params["gc2"]
    w3, b3 = params["gc3"]; w4, b4 = params["gc4"]
    wsu, bsu = params["src_union"]; wtu, btu = params["tgt_union"]
    sho = gcn_ref(s_uv, gcn_ref(s_vu, s_ufea, w1, b1), w3, b3)
    tho = gcn_ref(t_uv, gcn_ref(t_vu, t_ufea, w2, b2), w4, b4)
    su = jnp.concatenate([sho, s_ufea], 1) @ wsu.T + bsu
    tu = jnp.concatenate([tho, t_ufea], 1) @ wtu.T + btu
    su = recbole_padding_user(su, "source", opt)
    tu = recbole_padding_user(tu, "target", opt)
    out = rate * jax.nn.relu(su) + (1.0 - rate) * jax.nn.relu(tu)
    return out, out


# --------------------------------------------------------------------------- #
# main
# --------------------------------------------------------------------------- #
if __name__ == "__main__":
    opt = {
        "feature_dim": 32,
        "hidden_dim": 32,
        "dropout": 0.0,
        "leakey": 0.1,
        "rate": 0.7,
        "target_num_users": 9,
        "overlapped_num_users": 5,
        "total_num_users": 12,
        "target_num_items": 11,
        "overlapped_num_items": 4,
        "total_num_items": 17,
    }
    F = opt["feature_dim"]
    H = opt["hidden_dim"]
    n_source_users = (opt["overlapped_num_users"] - 1) + (
        opt["total_num_users"] - opt["target_num_users"])        # 7
    n_target_users = opt["target_num_users"] - 1                 # 8
    n_source_items = 6
    n_target_items = 10

    key = jax.random.PRNGKey(0)
    kp, k1, k2, k3, k4, k5, k6 = jax.random.split(key, 7)
    params = init_params(kp, F, H)

    source_ufea = jax.random.normal(k1, (n_source_users, F), jnp.float32)
    target_ufea = jax.random.normal(k2, (n_target_users, F), jnp.float32)
    source_UV_adj = jax.random.uniform(k3, (n_source_users, n_source_items))
    source_VU_adj = jax.random.uniform(k4, (n_source_items, n_source_users))
    target_UV_adj = jax.random.uniform(k5, (n_target_users, n_target_items))
    target_VU_adj = jax.random.uniform(k6, (n_target_users * 0 + n_target_items,
                                            n_target_users))

    # --- performance path: bf16 MXU inputs, f32 accumulation ---------------- #
    pp_bf16 = prepare_params(params, F, H, jnp.bfloat16)
    pi_bf16 = prepare_inputs(source_ufea, target_ufea,
                             source_UV_adj, source_VU_adj,
                             target_UV_adj, target_VU_adj, F, jnp.bfloat16)
    out_bf16, out_bf16_b = dgcn_layer_forward(
        pp_bf16, pi_bf16, opt, n_source_users, n_target_users)
    jax.block_until_ready(out_bf16)

    # --- f32 path: tight check of the kernel/tiling logic ------------------- #
    pp_f32 = prepare_params(params, F, H, jnp.float32)
    pi_f32 = prepare_inputs(source_ufea, target_ufea,
                            source_UV_adj, source_VU_adj,
                            target_UV_adj, target_VU_adj, F, jnp.float32)
    out_f32, _ = dgcn_layer_forward(
        pp_f32, pi_f32, opt, n_source_users, n_target_users)
    jax.block_until_ready(out_f32)

    ref, _ = _reference(params, opt, source_ufea, target_ufea,
                        source_UV_adj, source_VU_adj,
                        target_UV_adj, target_VU_adj)

    assert out_f32.shape == (opt["total_num_users"], F)
    assert out_bf16.shape == (opt["total_num_users"], F)
    assert jnp.allclose(out_f32, ref, rtol=1e-4, atol=1e-4), "f32 path mismatch"
    assert jnp.allclose(out_bf16, ref, rtol=5e-2, atol=7.5e-2), "bf16 path mismatch"
    assert jnp.allclose(out_bf16, out_bf16_b)
    print("KERNEL_OK")
</pallas_src>

<mosaic_0001>
module attributes {stable_mosaic.version = 11 : i64} {
  func.func @_matmul_kernel(%arg0: i32, %arg1: i32, %arg2: i32, %arg3: memref<128x128xbf16, #tpu.memory_space<vmem>>, %arg4: memref<128x128xbf16, #tpu.memory_space<vmem>>, %arg5: memref<1x128xf32, #tpu.memory_space<vmem>>, %arg6: memref<128x128xbf16, #tpu.memory_space<vmem>>, %arg7: memref<128x128xf32, #tpu.memory_space<vmem>>) attributes {dimension_semantics = [#tpu.dimension_semantics<parallel>, #tpu.dimension_semantics<parallel>, #tpu.dimension_semantics<arbitrary>], iteration_bounds = array<i64: 1, 1, 1>, scalar_prefetch = 0 : i64, scratch_operands = 1 : i64, tpu.core_type = #tpu.core_type<tc>, window_params = [{transform_indices = @transform_0, window_bounds = array<i64: 128, 128>}, {transform_indices = @transform_1, window_bounds = array<i64: 128, 128>}, {transform_indices = @transform_2, window_bounds = array<i64: 1, 128>}, {transform_indices = @transform_3, window_bounds = array<i64: 128, 128>}]} {
    %c0_i32 = arith.constant 0 : i32
    %0 = arith.cmpi eq, %arg2, %c0_i32 : i32
    %1 = arith.extui %0 : i1 to i32
    %c0_i32_0 = arith.constant 0 : i32
    %2 = arith.cmpi ne, %1, %c0_i32_0 : i32
    scf.if %2 {
      %cst_10 = arith.constant 0.000000e+00 : f32
      %12 = vector.broadcast %cst_10 : f32 to vector<128x128xf32>
      %c0_11 = arith.constant 0 : index
      %c0_12 = arith.constant 0 : index
      %13 = vector.load %arg7[%c0_11, %c0_12] : memref<128x128xf32, #tpu.memory_space<vmem>>, vector<128x128xf32>
      tpu.vector_store %arg7[%c0_11, %c0_12], %12 {strides = array<i32>} : memref<128x128xf32, #tpu.memory_space<vmem>>, vector<128x128xf32>,
    } else {
    }
    %c0 = arith.constant 0 : index
    %c0_1 = arith.constant 0 : index
    %3 = vector.load %arg7[%c0, %c0_1] : memref<128x128xf32, #tpu.memory_space<vmem>>, vector<128x128xf32>
    %c0_2 = arith.constant 0 : index
    %c0_3 = arith.constant 0 : index
    %4 = vector.load %arg3[%c0_2, %c0_3] : memref<128x128xbf16, #tpu.memory_space<vmem>>, vector<128x128xbf16>
    %c0_4 = arith.constant 0 : index
    %c0_5 = arith.constant 0 : index
    %5 = vector.load %arg4[%c0_4, %c0_5] : memref<128x128xbf16, #tpu.memory_space<vmem>>, vector<128x128xbf16>
    %cst = arith.constant dense<0.000000e+00> : vector<128x128xf32>
    %6 = tpu.matmul %4, %5, %cst {dimension_numbers = #tpu.dot_dimension_numbers<[1], [0], [0], [1], [0, 0, 1, 1], [], []>} : vector<128x128xbf16>, vector<128x128xbf16>, vector<128x128xf32> -> vector<128x128xf32>
    %7 = arith.addf %3, %6 : vector<128x128xf32>
    %c0_6 = arith.constant 0 : index
    %c0_7 = arith.constant 0 : index
    %8 = vector.load %arg7[%c0_6, %c0_7] : memref<128x128xf32, #tpu.memory_space<vmem>>, vector<128x128xf32>
    tpu.vector_store %arg7[%c0_6, %c0_7], %7 {strides = array<i32>} : memref<128x128xf32, #tpu.memory_space<vmem>>, vector<128x128xf32>,
    %c0_i32_8 = arith.constant 0 : i32
    %9 = arith.cmpi eq, %arg2, %c0_i32_8 : i32
    %10 = arith.extui %9 : i1 to i32
    %c0_i32_9 = arith.constant 0 : i32
    %11 = arith.cmpi ne, %10, %c0_i32_9 : i32
    scf.if %11 {
      %c0_10 = arith.constant 0 : index
      %c0_11 = arith.constant 0 : index
      %12 = vector.load %arg7[%c0_10, %c0_11] : memref<128x128xf32, #tpu.memory_space<vmem>>, vector<128x128xf32>
      %c0_12 = arith.constant 0 : index
      %c0_13 = arith.constant 0 : index
      %13 = vector.load %arg5[%c0_12, %c0_13] : memref<1x128xf32, #tpu.memory_space<vmem>>, vector<1x128xf32>
      %14 = vector.broadcast %13 : vector<1x128xf32> to vector<128x128xf32>
      %15 = arith.addf %12, %14 : vector<128x128xf32>
      %16 = arith.truncf %15 : vector<128x128xf32> to vector<128x128xbf16>
      %c0_14 = arith.constant 0 : index
      %c0_15 = arith.constant 0 : index
      %17 = vector.load %arg6[%c0_14, %c0_15] : memref<128x128xbf16, #tpu.memory_space<vmem>>, vector<128x128xbf16>
      tpu.vector_store %arg6[%c0_14, %c0_15], %16 {strides = array<i32>} : memref<128x128xbf16, #tpu.memory_space<vmem>>, vector<128x128xbf16>,
    } else {
    }
    return
  }
  func.func @transform_0(%arg0: i32, %arg1: i32, %arg2: i32) -> (i32, i32) {
    %c0_i32 = arith.constant 0 : i32
    return %arg0, %arg2 : i32, i32
  }
  func.func @transform_1(%arg0: i32, %arg1: i32, %arg2: i32) -> (i32, i32) {
    %c0_i32 = arith.constant 0 : i32
    return %arg2, %arg1 : i32, i32
  }
  func.func @transform_2(%arg0: i32, %arg1: i32, %arg2: i32) -> (i32, i32) {
    %c0_i32 = arith.constant 0 : i32
    %c0_i32_0 = arith.constant 0 : i32
    return %c0_i32, %arg1 : i32, i32
  }
  func.func @transform_3(%arg0: i32, %arg1: i32, %arg2: i32) -> (i32, i32) {
    %c0_i32 = arith.constant 0 : i32
    return %arg0, %arg1 : i32, i32
  }
}

</mosaic_0001>

<bundles_post_ra>
// kernel: tpu_custom_call.1
= control target key start
LH: loop header
LB: loop body
LE: loop exit
PB: predicated region body
PF: predicated region fallthrough
CT: control target
= control target key end

     0   :  { %8 = vsyncpa [#allocation4], 0  ;;  %s803_s0 = inlined_call_operand.hbm [shape: bf16[128,128], index: 0, kind: input, shape index: {}]   ;;  %s804_s1 = inlined_call_operand.hbm [shape: bf16[128,128], index: 1, kind: input, shape index: {}]   ;;  %s805_s2 = inlined_call_operand.vmem [shape: f32[1,128], index: 2, kind: input, shape index: {}]   ;;  %s806_s3 = inlined_call_operand.hbm [shape: bf16[128,128], index: 3, kind: output, shape index: {}]  }
   0x1   :  { %9 = vsyncpa [#allocation7], 0 }
   0x2   :  { %10 = vsyncpa [#allocation5], 0  ;;  %s730_s12 = smov [#allocation3]   ;;  %s658_s16 = scalar_lea.hbm %s803_s0, 1024 }
   0x3   :  { %s16_s13 = sshll.u32 %s730_s12, 4  ;;  %p659_p0 = scmp.ne.s32.totalorder %s803_s0, %s658_s16  ;;  %s17_s13 = int_to_ptr.vmem [resolvable:$true] %s16_s13 }
   0x4   :  { %p662_p1 = scmp.lt.u32.totalorder %s658_s16, %s803_s0 }
   0x6   :  { %p664_p2 = pnand %p662_p1, %p659_p0 }
   0x8   :  { %667 = shalt.err (!%p664_p2)
}
   0x9   :  { %s668_s21 = scalar_lea.vmem %s17_s13, 1024  ;;  %p673_p4 = scmp.lt.s32.totalorder %s17_s13, %s17_s13 }
   0xa   :  { %p669_p3 = scmp.ne.s32.totalorder %s17_s13, %s668_s21  ;;  %p674_p5 = scmp.lt.s32.totalorder %s668_s21, %s668_s21 }
   0xc   :  { %p675_p6 = por %p674_p5, %p673_p4 }
   0xe   :  { %p676_p7 = pnand %p675_p6, %p669_p3 }
  0x10   :  { %679 = shalt.err (!%p676_p7)
}
  0x11   :  { %s731_s22 = smov 64   ;;  %s732_s23 = smov 4  }
  0x12   :  { %22 = dma.hbm_to_vmem [thread:$0]  %s803_s0, 1024, %s17_s13, [#allocation4], %s731_s22, %s731_s22, %s732_s23  }
  0x13   :  { %s733_s26 = smov [#allocation6]   ;;  %s680_s30 = scalar_lea.hbm %s804_s1, 1024 }
  0x14   :  { %s28_s27 = sshll.u32 %s733_s26, 4  ;;  %p681_p8 = scmp.ne.s32.totalorder %s804_s1, %s680_s30  ;;  %s29_s27 = int_to_ptr.vmem [resolvable:$true] %s28_s27 }
  0x15   :  { %p684_p9 = scmp.lt.u32.totalorder %s680_s30, %s804_s1 }
  0x17   :  { %p686_p10 = pnand %p684_p9, %p681_p8 }
  0x19   :  { %689 = shalt.err (!%p686_p10)
}
  0x1a   :  { %s690_s8 = scalar_lea.vmem %s29_s27, 1024  ;;  %p695_p12 = scmp.lt.s32.totalorder %s29_s27, %s29_s27 }
  0x1b   :  { %p691_p11 = scmp.ne.s32.totalorder %s29_s27, %s690_s8  ;;  %p696_p13 = scmp.lt.s32.totalorder %s690_s8, %s690_s8 }
  0x1d   :  { %p697_p0 = por %p696_p13, %p695_p12 }
  0x1f   :  { %p698_p1 = pnand %p697_p0, %p691_p11 }
  0x21   :  { %701 = shalt.err (!%p698_p1)
}
  0x22   :  { %34 = dma.hbm_to_vmem [thread:$0]  %s804_s1, 1024, %s29_s27, [#allocation7], %s731_s22, %s731_s22, %s732_s23  }
  0x23   :  { %724 = dma.done.wait [#allocation4], 1024  }
  0x24   :  { %725 = vsyncadd [#allocation4], 4294966272 }
  0x25   :  { %726 = dma.done.wait [#allocation7], 1024  }
  0x26   :  { %727 = vsyncadd [#allocation7], 4294966272  ;;  %v642_v0 = vld [vmem:[#allocation6] sm:$0xff]   ;;  %v643_v1 = vld [vmem:[#allocation6 + $0x8] sm:$0xff]  }
  0x27   :  { %589 = vmatprep.subr.bf16.mxu0 %v642_v0  ;;  %621 = vmatprep.subr.bf16.mxu1 %v642_v0  ;;  %v644_v2 = vld [vmem:[#allocation6 + $0x10] sm:$0xff]   ;;  %v645_v3 = vld [vmem:[#allocation6 + $0x18] sm:$0xff]   ;;  %v650_v4 = vld [vmem:[#allocation3] sm:$0xff]  }
  0x28   :  { %590 = vmatpush3.bf16.msra.mxu0 %v642_v0  ;;  %629 = vmatpush3.bf16.msra.mxu1 %v642_v0  ;;  %v651_v5 = vld [vmem:[#allocation3 + $0x20] sm:$0xff]   ;;  %v647_v7 = vld [vmem:[#allocation6 + $0x28] sm:$0xff]   ;;  %v648_v8 = vld [vmem:[#allocation6 + $0x30] sm:$0xff]  }
  0x29   :  { %591 = vmatprep.subr.bf16.mxu0 %v643_v1  ;;  %622 = vmatprep.subr.bf16.mxu1 %v643_v1  ;;  %v646_v6 = vld [vmem:[#allocation6 + $0x20] sm:$0xff]   ;;  %v649_v9 = vld [vmem:[#allocation6 + $0x38] sm:$0xff]   ;;  %v652_v10 = vld [vmem:[#allocation3 + $0x8] sm:$0xff]  }
  0x2a   :  { %605 = vmatprep.mubr.bf16.mxu0 %v650_v4  ;;  %613 = vmatprep.mubr.bf16.mxu1 %v651_v5  ;;  %v653_v11 = vld [vmem:[#allocation3 + $0x28] sm:$0xff]   ;;  %v654_v12 = vld [vmem:[#allocation3 + $0x10] sm:$0xff]   ;;  %v656_v14 = vld [vmem:[#allocation3 + $0x18] sm:$0xff]  }
  0x2b   :  { %v655_v13 = vld [vmem:[#allocation3 + $0x30] sm:$0xff]   ;;  %v657_v15 = vld [vmem:[#allocation3 + $0x38] sm:$0xff]   ;;  %v493_v17 = vld [vmem:[%s805_s2] ss:$0 sm:$0xff]  ;;  %s734_s2 = smov [#allocation8]  }
  0x2c   :  { %592 = vmatpush3.bf16.msra.mxu0 %v643_v1  ;;  %630 = vmatpush3.bf16.msra.mxu1 %v643_v1  ;;  %s464_s11 = sshll.u32 %s734_s2, 4  ;;  %s465_s11 = int_to_ptr.vmem [resolvable:$true] %s464_s11 }
  0x2d   :  { %593 = vmatprep.subr.bf16.mxu0 %v644_v2  ;;  %623 = vmatprep.subr.bf16.mxu1 %v644_v2  ;;  %s702_s12 = scalar_lea.vmem %s465_s11, 1024  ;;  %p707_p3 = scmp.lt.s32.totalorder %s465_s11, %s465_s11 }
  0x2e   :  { %p703_p2 = scmp.ne.s32.totalorder %s465_s11, %s702_s12  ;;  %p708_p4 = scmp.lt.s32.totalorder %s702_s12, %s702_s12 }
  0x30   :  { %594 = vmatpush3.bf16.msra.mxu0 %v644_v2  ;;  %631 = vmatpush3.bf16.msra.mxu1 %v644_v2  ;;  %p709_p5 = por %p708_p4, %p707_p3 }
  0x31   :  { %595 = vmatprep.subr.bf16.mxu0 %v645_v3  ;;  %624 = vmatprep.subr.bf16.mxu1 %v645_v3 }
  0x32   :  { %p710_p6 = pnand %p709_p5, %p703_p2 }
  0x34   :  { %596 = vmatpush3.bf16.msra.mxu0 %v645_v3  ;;  %632 = vmatpush3.bf16.msra.mxu1 %v645_v3 }
  0x35   :  { %597 = vmatprep.subr.bf16.mxu0 %v646_v6  ;;  %625 = vmatprep.subr.bf16.mxu1 %v646_v6 }
  0x38   :  { %598 = vmatpush3.bf16.msra.mxu0 %v646_v6  ;;  %633 = vmatpush3.bf16.msra.mxu1 %v646_v6 }
  0x39   :  { %599 = vmatprep.subr.bf16.mxu0 %v647_v7  ;;  %626 = vmatprep.subr.bf16.mxu1 %v647_v7 }
  0x3c   :  { %600 = vmatpush3.bf16.msra.mxu0 %v647_v7  ;;  %634 = vmatpush3.bf16.msra.mxu1 %v647_v7 }
  0x3d   :  { %601 = vmatprep.subr.bf16.mxu0 %v648_v8  ;;  %627 = vmatprep.subr.bf16.mxu1 %v648_v8 }
  0x40   :  { %602 = vmatpush3.bf16.msra.mxu0 %v648_v8  ;;  %635 = vmatpush3.bf16.msra.mxu1 %v648_v8 }
  0x41   :  { %603 = vmatprep.subr.bf16.mxu0 %v649_v9  ;;  %628 = vmatprep.subr.bf16.mxu1 %v649_v9 }
  0x44   :  { %604 = vmatpush3.bf16.msra.mxu0 %v649_v9  ;;  %636 = vmatpush3.bf16.msra.mxu1 %v649_v9 }
  0x47   :  { %606 = vmatmul.mubr.bf16.vlgmr.msra.gmra.mrb[0].mxu0 %v652_v10  ;;  %614 = vmatmul.mubr.bf16.vlgmr.msra.gmra.mrb[0].mxu1 %v653_v11 }
  0x48   :  { %609 = vmatprep.mubr.bf16.mxu0 %v654_v12  ;;  %617 = vmatprep.mubr.bf16.mxu1 %v655_v13 }
  0x4f   :  { %610 = vmatmul.mubr.bf16.gmra.mrb[4].mxu0 %v656_v14  ;;  %618 = vmatmul.mubr.bf16.gmra.mrb[4].mxu1 %v657_v15 }
 0x11a   :  { %v607_v16 = vpop.f32.mrb[0].mxu0  ;;  %v615_v18 = vpop.f32.mrb[0].mxu1 }
 0x11b   :  { %v242_v19 = vpop.f32.mrb[1].mxu0  ;;  %v274_v20 = vpop.f32.mrb[1].mxu1  ;;  %v365_v23 = vadd.f32 %v607_v16, %v493_v17  ;;  %v373_v24 = vadd.f32 %v615_v18, %v493_v17 }
 0x11c   :  { %v608_v21 = vpop.f32.mrb[2].mxu0  ;;  %v616_v22 = vpop.f32.mrb[2].mxu1  ;;  %v363_v29 = vadd.f32 %v493_v17, %v242_v19  ;;  %v371_v30 = vadd.f32 %v493_v17, %v274_v20 }
 0x11d   :  { %v366_v25 = vadd.f32 %v608_v21, %v493_v17  ;;  %v374_v26 = vadd.f32 %v616_v22, %v493_v17  ;;  %v245_v27 = vpop.f32.mrb[3].mxu0  ;;  %v277_v28 = vpop.f32.mrb[3].mxu1 }
 0x11e   :  { %v364_v31 = vadd.f32 %v493_v17, %v245_v27  ;;  %v372_v32 = vadd.f32 %v493_v17, %v277_v28 }
 0x11f   :  { %v534_v33 = vpack.c.bf16 %v366_v25, %v365_v23  ;;  %v554_v34 = vpack.c.bf16 %v374_v26, %v373_v24 }
 0x120   :  { %v529_v35 = vpack.c.bf16 %v364_v31, %v363_v29  ;;  %v549_v36 = vpack.c.bf16 %v372_v32, %v371_v30 }
 0x121   :  { %566 = vst [vmem:[#allocation8 + $0x8] sm:$0xff] %v534_v33   ;;  %570 = vst [vmem:[#allocation8 + $0x28] sm:$0xff] %v554_v34  }
 0x122   :  { %530 = vst [vmem:[#allocation8] sm:$0xff] %v529_v35   ;;  %569 = vst [vmem:[#allocation8 + $0x20] sm:$0xff] %v549_v36   ;;  %v611_v37 = vpop.f32.mrb[4].mxu0  ;;  %v619_v38 = vpop.f32.mrb[4].mxu1 }
 0x123   :  { %v258_v39 = vpop.f32.mrb[5].mxu0  ;;  %v290_v40 = vpop.f32.mrb[5].mxu1  ;;  %v369_v43 = vadd.f32 %v611_v37, %v493_v17  ;;  %v377_v44 = vadd.f32 %v619_v38, %v493_v17 }
 0x124   :  { %v612_v41 = vpop.f32.mrb[6].mxu0  ;;  %v620_v42 = vpop.f32.mrb[6].mxu1  ;;  %v367_v49 = vadd.f32 %v493_v17, %v258_v39  ;;  %v375_v50 = vadd.f32 %v493_v17, %v290_v40 }
 0x125   :  { %v370_v45 = vadd.f32 %v612_v41, %v493_v17  ;;  %v378_v46 = vadd.f32 %v620_v42, %v493_v17  ;;  %v261_v47 = vpop.f32.mrb[7].mxu0  ;;  %v293_v48 = vpop.f32.mrb[7].mxu1 }
 0x126   :  { %v368_v51 = vadd.f32 %v493_v17, %v261_v47  ;;  %v376_v52 = vadd.f32 %v493_v17, %v293_v48 }
 0x127   :  { %v544_v53 = vpack.c.bf16 %v370_v45, %v369_v43  ;;  %v564_v54 = vpack.c.bf16 %v378_v46, %v377_v44 }
 0x128   :  { %v539_v55 = vpack.c.bf16 %v368_v51, %v367_v49  ;;  %v559_v56 = vpack.c.bf16 %v376_v52, %v375_v50 }
 0x129   :  { %568 = vst [vmem:[#allocation8 + $0x18] sm:$0xff] %v544_v53   ;;  %572 = vst [vmem:[#allocation8 + $0x38] sm:$0xff] %v564_v54  }
 0x12a   :  { %567 = vst [vmem:[#allocation8 + $0x10] sm:$0xff] %v539_v55   ;;  %571 = vst [vmem:[#allocation8 + $0x30] sm:$0xff] %v559_v56  }
 0x12b   :  { %713 = shalt.err (!%p710_p6)
}
 0x12c   :  { %s714_s15 = scalar_lea.hbm %s806_s3, 1024 }
 0x12d   :  { %p715_p7 = scmp.ne.s32.totalorder %s806_s3, %s714_s15  ;;  %p718_p8 = scmp.lt.u32.totalorder %s714_s15, %s806_s3 }
 0x12f   :  { %p720_p9 = pnand %p718_p8, %p715_p7 }
 0x131   :  { %723 = shalt.err (!%p720_p9)
}
 0x132   :  { %470 = dma.vmem_to_hbm [thread:$0]  %s465_s11, 1024, %s806_s3, [#allocation5], %s731_s22, %s731_s22, %s732_s23  }
 0x133   :  { %728 = dma.done.wait [#allocation5], 1024  }
 0x134   :  { %729 = vsyncadd [#allocation5], 4294966272 }
 0x135   :  { %474 = vsyncpa [#allocation4], 1 }
 0x136   :  { %475 = vsyncpa [#allocation7], 1 }
 0x137   :  { %476 = vsyncpa [#allocation5], 1 }

</bundles_post_ra>
